<compile_context>
chip_gen: v7x
topology: tpu7x:2x2x1
jax: 0.10.0
libtpu: 0.0.40
codegen_flags: <defaults>
</compile_context>

<pallas_src>
import jax
import jax.numpy as jnp
from jax.experimental import pallas as pl
from jax.experimental.pallas import tpu as pltpu

INPUT_SIZE = 48
NUM_UNITS = 3
HIDDEN = (64, 32, 16)
L4_ROWS = 8  # layer-4 rows padded up to one sublane group


def _round_up(a, m):
    return ((a + m - 1) // m) * m


def encoder_kernel(xt_ref,
                   w1t_ref, b1_ref,
                   w2t_ref, b2_ref,
                   w3t_ref, b3_ref,
                   w4t_ref, b4_ref,
                   out_ref):
    """Full MLP forward for one batch tile (batch on the lane axis), resident in VMEM.

    xt_ref: (48, tb) f32.  w*t: transposed weights, bf16.  biases: (rows, 1) f32.
    out_ref: (8, tb) f32 (rows 3..7 are padding, sliced off in the wrapper).
    """
    # In-kernel bf16 cast of the X tile (no separate wrapper cast pass over HBM).
    x = xt_ref[...].astype(jnp.bfloat16)                                            # (48, tb)

    # Layer 1: (64, 48) @ (48, tb) -> (64, tb); f32 accumulation, f32 bias + tanh.
    h = jnp.dot(w1t_ref[...], x, preferred_element_type=jnp.float32)
    h = jnp.tanh(h + b1_ref[...])
    # Layer 2: (32, 64) @ (64, tb) -> (32, tb)
    h = jnp.dot(w2t_ref[...], h.astype(jnp.bfloat16), preferred_element_type=jnp.float32)
    h = jnp.tanh(h + b2_ref[...])
    # Layer 3: (16, 32) @ (32, tb) -> (16, tb)
    h = jnp.dot(w3t_ref[...], h.astype(jnp.bfloat16), preferred_element_type=jnp.float32)
    h = jnp.tanh(h + b3_ref[...])
    # Layer 4 (fused): (8, 16) @ (16, tb) -> (8, tb); single tanh, single lane-dense store.
    h = jnp.dot(w4t_ref[...], h.astype(jnp.bfloat16), preferred_element_type=jnp.float32)
    out_ref[...] = jnp.tanh(h + b4_ref[...]).astype(out_ref.dtype)


def _vmem_limit_bytes(tb):
    """Scoped-VMEM request sized from the batch tile (with headroom, no low clamp)."""
    x_tile = INPUT_SIZE * tb * 4                            # f32 X tile
    out_tile = L4_ROWS * tb * 4                             # f32 output tile
    acts_f32 = (sum(HIDDEN) + L4_ROWS) * tb * 4             # f32 activations
    acts_bf16 = (INPUT_SIZE + sum(HIDDEN)) * tb * 2         # bf16 MXU operand copies
    wts = (2 * (HIDDEN[0] * INPUT_SIZE + HIDDEN[1] * HIDDEN[0]
                + HIDDEN[2] * HIDDEN[1] + L4_ROWS * HIDDEN[2])
           + 4 * (sum(HIDDEN) + L4_ROWS))
    total = 2 * (x_tile + out_tile) + acts_f32 + acts_bf16 + wts + (4 << 20)  # x2 = dbl-buffer
    return int(min(max(total, 8 << 20), 48 << 20))


def encoder_forward(x, params, *, batch_tile=2048):
    """x: (B, INPUT_SIZE) float32. params: dict of w1..w4 ((in,out)), b1..b4 ((1,out))."""
    B = x.shape[0]
    out_dtype = x.dtype

    # Feature-major (transposed) weights.  Wide layers in bf16 for the MXU; biases f32.
    w1t = jnp.transpose(params["w1"]).astype(jnp.bfloat16)          # (64, 48)
    w2t = jnp.transpose(params["w2"]).astype(jnp.bfloat16)          # (32, 64)
    w3t = jnp.transpose(params["w3"]).astype(jnp.bfloat16)          # (16, 32)
    w4t = jnp.transpose(params["w4"]).astype(jnp.bfloat16)          # (3, 16)
    w4t = jnp.pad(w4t, ((0, L4_ROWS - NUM_UNITS), (0, 0)))          # (8, 16), zero rows
    b1 = jnp.reshape(params["b1"].astype(jnp.float32), (HIDDEN[0], 1))
    b2 = jnp.reshape(params["b2"].astype(jnp.float32), (HIDDEN[1], 1))
    b3 = jnp.reshape(params["b3"].astype(jnp.float32), (HIDDEN[2], 1))
    b4 = jnp.pad(jnp.reshape(params["b4"].astype(jnp.float32), (NUM_UNITS, 1)),
                 ((0, L4_ROWS - NUM_UNITS), (0, 0)))                # (8, 1)

    # Batch tile: multiple of 128 (batch lives on the lane axis).  Cap it so large batches
    # still produce >= ~8 grid steps (v7x shards the "parallel" axis across its 2 TCs).
    tb_req = _round_up(max(int(batch_tile), 128), 128)
    tb_cap = _round_up(max(pl.cdiv(B, 8), 1), 128)
    tb = max(min(tb_req, tb_cap), 128)
    b_pad = _round_up(B, tb)
    grid = (b_pad // tb,)

    # Feature-major X, kept f32 in HBM (bf16 cast happens in-kernel).
    x_t = jnp.transpose(x.astype(jnp.float32))                      # (48, B)
    if b_pad != B:
        x_t = jnp.pad(x_t, ((0, 0), (0, b_pad - B)))

    full = lambda arr: pl.BlockSpec(arr.shape, lambda i: (0, 0))

    out_t = pl.pallas_call(
        encoder_kernel,
        out_shape=jax.ShapeDtypeStruct((L4_ROWS, b_pad), jnp.float32),
        grid_spec=pltpu.PrefetchScalarGridSpec(
            num_scalar_prefetch=0,
            grid=grid,
            in_specs=[
                pl.BlockSpec((INPUT_SIZE, tb), lambda i: (0, i)),    # X^T tile over batch lanes
                full(w1t), full(b1),
                full(w2t), full(b2),
                full(w3t), full(b3),
                full(w4t), full(b4),
            ],
            out_specs=pl.BlockSpec((L4_ROWS, tb), lambda i: (0, i)),
        ),
        compiler_params=pltpu.CompilerParams(
            dimension_semantics=("parallel",),
            vmem_limit_bytes=_vmem_limit_bytes(tb)),
    )(x_t, w1t, b1, w2t, b2, w3t, b3, w4t, b4)

    # Slice off the padded rows / batch and restore (B, NUM_UNITS).
    return jnp.transpose(out_t[:NUM_UNITS, :B]).astype(out_dtype)


def init_params(key):
    """PyTorch nn.Linear default init: U(-1/sqrt(fan_in), 1/sqrt(fan_in))."""
    dims = (INPUT_SIZE,) + HIDDEN + (NUM_UNITS,)
    params = {}
    for idx in range(4):
        fan_in, fan_out = dims[idx], dims[idx + 1]
        key, kw, kb = jax.random.split(key, 3)
        bound = 1.0 / jnp.sqrt(fan_in)
        params[f"w{idx + 1}"] = jax.random.uniform(
            kw, (fan_in, fan_out), jnp.float32, -bound, bound)
        params[f"b{idx + 1}"] = jax.random.uniform(
            kb, (1, fan_out), jnp.float32, -bound, bound)
    return params


def reference_forward(x, params, *, bf16_operands=False):
    h = x.astype(jnp.float32)
    for i in range(1, 5):
        w = params[f"w{i}"]
        a = h
        if bf16_operands:
            w = w.astype(jnp.bfloat16)
            a = h.astype(jnp.bfloat16)
        h = jnp.tanh(jnp.dot(a, w, preferred_element_type=jnp.float32)
                     + params[f"b{i}"].astype(jnp.float32))
    return h.astype(x.dtype)


if __name__ == "__main__":
    key = jax.random.PRNGKey(0)
    kx, kp, kx2 = jax.random.split(key, 3)
    params = init_params(kp)

    # Small primary test (single grid step).
    B = 8
    x = jax.random.normal(kx, (B, INPUT_SIZE), jnp.float32)
    out = jax.block_until_ready(encoder_forward(x, params))
    assert out.shape == (B, NUM_UNITS)
    ref_bf16 = reference_forward(x, params, bf16_operands=True)   # same-precision reference
    ref_f32 = reference_forward(x, params)                        # original f32 semantics
    assert jnp.allclose(out, ref_bf16, atol=3e-3, rtol=3e-3), "mismatch vs bf16-operand reference"
    assert jnp.allclose(out, ref_f32, atol=5e-2, rtol=5e-2), "drifted too far from f32 reference"

    # Secondary test: ragged batch, multi-step grid (exercises padding + pipelined tiles).
    B2 = 200
    x2 = jax.random.normal(kx2, (B2, INPUT_SIZE), jnp.float32)
    out2 = jax.block_until_ready(encoder_forward(x2, params, batch_tile=256))
    assert out2.shape == (B2, NUM_UNITS)
    ref2 = reference_forward(x2, params, bf16_operands=True)
    assert jnp.allclose(out2, ref2, atol=3e-3, rtol=3e-3), "mismatch on ragged/multi-tile batch"

    print("KERNEL_OK")
</pallas_src>

<mosaic_0001>
module attributes {stable_mosaic.version = 11 : i64} {
  func.func @encoder_kernel(%arg0: i32, %arg1: memref<48x128xf32, #tpu.memory_space<vmem>>, %arg2: memref<64x48xbf16, #tpu.memory_space<vmem>>, %arg3: memref<64x1xf32, #tpu.memory_space<vmem>>, %arg4: memref<32x64xbf16, #tpu.memory_space<vmem>>, %arg5: memref<32x1xf32, #tpu.memory_space<vmem>>, %arg6: memref<16x32xbf16, #tpu.memory_space<vmem>>, %arg7: memref<16x1xf32, #tpu.memory_space<vmem>>, %arg8: memref<8x16xbf16, #tpu.memory_space<vmem>>, %arg9: memref<8x1xf32, #tpu.memory_space<vmem>>, %arg10: memref<8x128xf32, #tpu.memory_space<vmem>>) attributes {dimension_semantics = [#tpu.dimension_semantics<parallel>], iteration_bounds = array<i64: 1>, scalar_prefetch = 0 : i64, scratch_operands = 0 : i64, tpu.core_type = #tpu.core_type<tc>, window_params = [{transform_indices = @transform_0, window_bounds = array<i64: 48, 128>}, {pipeline_mode = #tpu.pipeline_mode<synchronous>, transform_indices = @transform_1, window_bounds = array<i64: 64, 48>}, {pipeline_mode = #tpu.pipeline_mode<synchronous>, transform_indices = @transform_2, window_bounds = array<i64: 64, 1>}, {pipeline_mode = #tpu.pipeline_mode<synchronous>, transform_indices = @transform_3, window_bounds = array<i64: 32, 64>}, {pipeline_mode = #tpu.pipeline_mode<synchronous>, transform_indices = @transform_4, window_bounds = array<i64: 32, 1>}, {pipeline_mode = #tpu.pipeline_mode<synchronous>, transform_indices = @transform_5, window_bounds = array<i64: 16, 32>}, {pipeline_mode = #tpu.pipeline_mode<synchronous>, transform_indices = @transform_6, window_bounds = array<i64: 16, 1>}, {pipeline_mode = #tpu.pipeline_mode<synchronous>, transform_indices = @transform_7, window_bounds = array<i64: 8, 16>}, {pipeline_mode = #tpu.pipeline_mode<synchronous>, transform_indices = @transform_8, window_bounds = array<i64: 8, 1>}, {transform_indices = @transform_9, window_bounds = array<i64: 8, 128>}]} {
    %c0 = arith.constant 0 : index
    %c0_0 = arith.constant 0 : index
    %0 = vector.load %arg1[%c0, %c0_0] : memref<48x128xf32, #tpu.memory_space<vmem>>, vector<48x128xf32>
    %1 = arith.truncf %0 : vector<48x128xf32> to vector<48x128xbf16>
    %c0_1 = arith.constant 0 : index
    %c0_2 = arith.constant 0 : index
    %2 = vector.load %arg2[%c0_1, %c0_2] : memref<64x48xbf16, #tpu.memory_space<vmem>>, vector<64x48xbf16>
    %cst = arith.constant dense<0.000000e+00> : vector<64x128xf32>
    %3 = tpu.matmul %2, %1, %cst {dimension_numbers = #tpu.dot_dimension_numbers<[1], [0], [0], [1], [0, 0, 1, 1], [], []>} : vector<64x48xbf16>, vector<48x128xbf16>, vector<64x128xf32> -> vector<64x128xf32>
    %c0_3 = arith.constant 0 : index
    %c0_4 = arith.constant 0 : index
    %4 = vector.load %arg3[%c0_3, %c0_4] : memref<64x1xf32, #tpu.memory_space<vmem>>, vector<64x1xf32>
    %5 = vector.broadcast %4 : vector<64x1xf32> to vector<64x128xf32>
    %6 = arith.addf %3, %5 : vector<64x128xf32>
    %7 = math.tanh %6 : vector<64x128xf32>
    %c0_5 = arith.constant 0 : index
    %c0_6 = arith.constant 0 : index
    %8 = vector.load %arg4[%c0_5, %c0_6] : memref<32x64xbf16, #tpu.memory_space<vmem>>, vector<32x64xbf16>
    %9 = arith.truncf %7 : vector<64x128xf32> to vector<64x128xbf16>
    %cst_7 = arith.constant dense<0.000000e+00> : vector<32x128xf32>
    %10 = tpu.matmul %8, %9, %cst_7 {dimension_numbers = #tpu.dot_dimension_numbers<[1], [0], [0], [1], [0, 0, 1, 1], [], []>} : vector<32x64xbf16>, vector<64x128xbf16>, vector<32x128xf32> -> vector<32x128xf32>
    %c0_8 = arith.constant 0 : index
    %c0_9 = arith.constant 0 : index
    %11 = vector.load %arg5[%c0_8, %c0_9] : memref<32x1xf32, #tpu.memory_space<vmem>>, vector<32x1xf32>
    %12 = vector.broadcast %11 : vector<32x1xf32> to vector<32x128xf32>
    %13 = arith.addf %10, %12 : vector<32x128xf32>
    %14 = math.tanh %13 : vector<32x128xf32>
    %c0_10 = arith.constant 0 : index
    %c0_11 = arith.constant 0 : index
    %15 = vector.load %arg6[%c0_10, %c0_11] : memref<16x32xbf16, #tpu.memory_space<vmem>>, vector<16x32xbf16>
    %16 = arith.truncf %14 : vector<32x128xf32> to vector<32x128xbf16>
    %cst_12 = arith.constant dense<0.000000e+00> : vector<16x128xf32>
    %17 = tpu.matmul %15, %16, %cst_12 {dimension_numbers = #tpu.dot_dimension_numbers<[1], [0], [0], [1], [0, 0, 1, 1], [], []>} : vector<16x32xbf16>, vector<32x128xbf16>, vector<16x128xf32> -> vector<16x128xf32>
    %c0_13 = arith.constant 0 : index
    %c0_14 = arith.constant 0 : index
    %18 = vector.load %arg7[%c0_13, %c0_14] : memref<16x1xf32, #tpu.memory_space<vmem>>, vector<16x1xf32>
    %19 = vector.broadcast %18 : vector<16x1xf32> to vector<16x128xf32>
    %20 = arith.addf %17, %19 : vector<16x128xf32>
    %21 = math.tanh %20 : vector<16x128xf32>
    %c0_15 = arith.constant 0 : index
    %c0_16 = arith.constant 0 : index
    %22 = vector.load %arg8[%c0_15, %c0_16] : memref<8x16xbf16, #tpu.memory_space<vmem>>, vector<8x16xbf16>
    %23 = arith.truncf %21 : vector<16x128xf32> to vector<16x128xbf16>
    %cst_17 = arith.constant dense<0.000000e+00> : vector<8x128xf32>
    %24 = tpu.matmul %22, %23, %cst_17 {dimension_numbers = #tpu.dot_dimension_numbers<[1], [0], [0], [1], [0, 0, 1, 1], [], []>} : vector<8x16xbf16>, vector<16x128xbf16>, vector<8x128xf32> -> vector<8x128xf32>
    %c0_18 = arith.constant 0 : index
    %c0_19 = arith.constant 0 : index
    %25 = vector.load %arg9[%c0_18, %c0_19] : memref<8x1xf32, #tpu.memory_space<vmem>>, vector<8x1xf32>
    %26 = vector.broadcast %25 : vector<8x1xf32> to vector<8x128xf32>
    %27 = arith.addf %24, %26 : vector<8x128xf32>
    %28 = math.tanh %27 : vector<8x128xf32>
    %c0_20 = arith.constant 0 : index
    %c0_21 = arith.constant 0 : index
    %29 = vector.load %arg10[%c0_20, %c0_21] : memref<8x128xf32, #tpu.memory_space<vmem>>, vector<8x128xf32>
    tpu.vector_store %arg10[%c0_20, %c0_21], %28 {strides = array<i32>} : memref<8x128xf32, #tpu.memory_space<vmem>>, vector<8x128xf32>,
    return
  }
  func.func @transform_0(%arg0: i32) -> (i32, i32) {
    %c0_i32 = arith.constant 0 : i32
    %c0_i32_0 = arith.constant 0 : i32
    return %c0_i32, %arg0 : i32, i32
  }
  func.func @transform_1(%arg0: i32) -> (i32, i32) {
    %c0_i32 = arith.constant 0 : i32
    %c0_i32_0 = arith.constant 0 : i32
    %c0_i32_1 = arith.constant 0 : i32
    return %c0_i32, %c0_i32_0 : i32, i32
  }
  func.func @transform_2(%arg0: i32) -> (i32, i32) {
    %c0_i32 = arith.constant 0 : i32
    %c0_i32_0 = arith.constant 0 : i32
    %c0_i32_1 = arith.constant 0 : i32
    return %c0_i32, %c0_i32_0 : i32, i32
  }
  func.func @transform_3(%arg0: i32) -> (i32, i32) {
    %c0_i32 = arith.constant 0 : i32
    %c0_i32_0 = arith.constant 0 : i32
    %c0_i32_1 = arith.constant 0 : i32
    return %c0_i32, %c0_i32_0 : i32, i32
  }
  func.func @transform_4(%arg0: i32) -> (i32, i32) {
    %c0_i32 = arith.constant 0 : i32
    %c0_i32_0 = arith.constant 0 : i32
    %c0_i32_1 = arith.constant 0 : i32
    return %c0_i32, %c0_i32_0 : i32, i32
  }
  func.func @transform_5(%arg0: i32) -> (i32, i32) {
    %c0_i32 = arith.constant 0 : i32
    %c0_i32_0 = arith.constant 0 : i32
    %c0_i32_1 = arith.constant 0 : i32
    return %c0_i32, %c0_i32_0 : i32, i32
  }
  func.func @transform_6(%arg0: i32) -> (i32, i32) {
    %c0_i32 = arith.constant 0 : i32
    %c0_i32_0 = arith.constant 0 : i32
    %c0_i32_1 = arith.constant 0 : i32
    return %c0_i32, %c0_i32_0 : i32, i32
  }
  func.func @transform_7(%arg0: i32) -> (i32, i32) {
    %c0_i32 = arith.constant 0 : i32
    %c0_i32_0 = arith.constant 0 : i32
    %c0_i32_1 = arith.constant 0 : i32
    return %c0_i32, %c0_i32_0 : i32, i32
  }
  func.func @transform_8(%arg0: i32) -> (i32, i32) {
    %c0_i32 = arith.constant 0 : i32
    %c0_i32_0 = arith.constant 0 : i32
    %c0_i32_1 = arith.constant 0 : i32
    return %c0_i32, %c0_i32_0 : i32, i32
  }
  func.func @transform_9(%arg0: i32) -> (i32, i32) {
    %c0_i32 = arith.constant 0 : i32
    %c0_i32_0 = arith.constant 0 : i32
    return %c0_i32, %arg0 : i32, i32
  }
}

</mosaic_0001>

<bundles_post_ra>
// kernel: tpu_custom_call.1
= control target key start
LH: loop header
LB: loop body
LE: loop exit
PB: predicated region body
PF: predicated region fallthrough
CT: control target
= control target key end

     0   :  { %vm119_vm0 = vcmask 392192   ;;  %v583_v7 = vmov 0   ;;  %s742_s0 = inlined_call_operand.vmem [shape: f32[48,128], index: 0, kind: input, shape index: {}]   ;;  %s743_s1 = inlined_call_operand.vmem [shape: bf16[64,48], index: 1, kind: input, shape index: {}]   ;;  %s744_s2 = inlined_call_operand.vmem [shape: f32[64,1], index: 2, kind: input, shape index: {}]   ;;  %s745_s3 = inlined_call_operand.vmem [shape: bf16[32,64], index: 3, kind: input, shape index: {}]   ;;  %s746_s4 = inlined_call_operand.vmem [shape: f32[32,1], index: 4, kind: input, shape index: {}]   ;;  %s747_s5 = inlined_call_operand.vmem [shape: bf16[16,32], index: 5, kind: input, shape index: {}]   ;;  %s748_s6 = inlined_call_operand.vmem [shape: f32[16,1], index: 6, kind: input, shape index: {}]   ;;  %s749_s7 = inlined_call_operand.vmem [shape: bf16[8,16], index: 7, kind: input, shape index: {}]   ;;  %s750_s8 = inlined_call_operand.vmem [shape: f32[8,1], index: 8, kind: input, shape index: {}]   ;;  %s751_s9 = inlined_call_operand.hbm [shape: f32[8,128], index: 9, kind: output, shape index: {}]  }
   0x1   :  { %v34_v0 = vld [vmem:[%s742_s0] sm:$0xff]  ;;  %v35_v1 = vld [vmem:[%s742_s0 + $0x8] sm:$0xff]  ;;  %v36_v2 = vld [vmem:[%s742_s0 + $0x10] sm:$0xff]  ;;  %520 = vset.pattern.permute.xlu0 %v583_v7  ;;  %521 = vset.pattern.permute.xlu1 %v583_v7 }
   0x2   :  { %v40_v3 = vpack.c.bf16 %v35_v1, %v34_v0  ;;  %v37_v4 = vld [vmem:[%s742_s0 + $0x18] sm:$0xff]  ;;  %v38_v5 = vld [vmem:[%s742_s0 + $0x20] sm:$0xff]  ;;  %v39_v6 = vld [vmem:[%s742_s0 + $0x28] sm:$0xff] }
   0x3   :  { %v41_v8 = vpack.c.bf16 %v37_v4, %v36_v2  ;;  %v522_v9 = vld [vmem:[%s743_s1] sm:$0xff]   ;;  %v42_v10 = vpack.c.bf16 %v39_v6, %v38_v5  ;;  %v53_v12 = vld [vmem:[%s744_s2 + $0x10] sm:$0xff]  ;;  %v52_v13 = vld [vmem:[%s744_s2 + $0x8] sm:$0xff] }
   0x4   :  { %476 = vmatprep.subr.bf16.mxu0 %v40_v3  ;;  %482 = vmatprep.mubr.msk.bf16.mxu0 %vm119_vm0, %v522_v9  ;;  %v51_v11 = vld [vmem:[%s744_s2] sm:$0xff]  ;;  %v54_v14 = vld [vmem:[%s744_s2 + $0x18] sm:$0xff]  ;;  %v523_v15 = vld [vmem:[%s743_s1 + $0x8] sm:$0xff]  }
   0x5   :  { %477 = vmatpush3.bf16.msra.mxu0 %v40_v3  ;;  %61 = vperm.xlu0 %520, %v51_v11   ;;  %v524_v16 = vld [vmem:[%s743_s1 + $0x10] sm:$0xff]   ;;  %v55_v17 = vld [vmem:[%s744_s2 + $0x20] sm:$0xff]  ;;  %v56_v18 = vld [vmem:[%s744_s2 + $0x28] sm:$0xff] }
   0x6   :  { %478 = vmatprep.subr.bf16.mxu0 %v41_v8  ;;  %71 = vperm.xlu1 %521, %v53_v12  }
   0x9   :  { %479 = vmatpush3.bf16.msra.mxu0 %v41_v8  ;;  %66 = vperm.xlu0 %520, %v52_v13  }
   0xa   :  { %480 = vmatprep.subr.bf16.mxu0 %v42_v10  ;;  %76 = vperm.xlu1 %521, %v54_v14  }
   0xd   :  { %481 = vmatpush3.bf16.msra.mxu0 %v42_v10 }
   0xe   :  { %14 = vsyncpa [#allocation3], 0  ;;  %81 = vperm.xlu0 %520, %v55_v17   ;;  %v57_v19 = vld [vmem:[%s744_s2 + $0x30] sm:$0xff]  ;;  %86 = vperm.xlu1 %521, %v56_v18   ;;  %v58_v20 = vld [vmem:[%s744_s2 + $0x38] sm:$0xff]  ;;  %vm247_vm1 = vcmask 523264   ;;  %v584_v3 = vmov 0.0  }
   0xf   :  { %v525_v21 = vld [vmem:[%s743_s1 + $0x18] sm:$0xff]   ;;  %v213_v22 = vld [vmem:[%s746_s4] sm:$0xff]  ;;  %v214_v23 = vld [vmem:[%s746_s4 + $0x8] sm:$0xff]  ;;  %510 = vmatprep.subr.bf16.mxu0 %v584_v3  ;;  %vm585_vm2 = vmmov 0   ;;  %vm328_vm3 = vcmask 261120   ;;  %vm383_vm4 = vcmask 130048  }
  0x10   :  { %483 = vmatmul.mubr.msk.bf16.vlgmr.msra.gmra.mrb[0].mxu0 %vm119_vm0, %v523_v15  ;;  %v215_v24 = vld [vmem:[%s746_s4 + $0x10] sm:$0xff]  ;;  %v216_v25 = vld [vmem:[%s746_s4 + $0x18] sm:$0xff]  ;;  %v311_v26 = vld [vmem:[%s748_s6] sm:$0xff] }
  0x11   :  { %486 = vmatprep.mubr.msk.bf16.mxu0 %vm119_vm0, %v524_v16  ;;  %v312_v27 = vld [vmem:[%s748_s6 + $0x8] sm:$0xff]  ;;  %v377_v28 = vld [vmem:[%s750_s8] sm:$0xff] }
  0x12   :  { %91 = vperm.xlu0 %520, %v57_v19   ;;  %96 = vperm.xlu1 %521, %v58_v20   ;;  %v526_v29 = vld [vmem:[%s745_s3] sm:$0xff]   ;;  %v527_v2 = vld [vmem:[%s745_s3 + $0x8] sm:$0xff]  }
  0x13   :  { %498 = vmatprep.mubr.msk.bf16.mxu1 %vm247_vm1, %v526_v29 }
  0x16   :  { %219 = vperm.xlu0 %520, %v213_v22   ;;  %224 = vperm.xlu1 %521, %v214_v23   ;;  %v528_v22 = vld [vmem:[%s747_s5] sm:$0xff]   ;;  %s586_s5 = smov [#allocation2]  }
  0x17   :  { %s435_s17 = sshll.u32 %s586_s5, 4  ;;  %s436_s17 = int_to_ptr.vmem [resolvable:$true] %s435_s17 }
  0x18   :  { %487 = vmatmul.mubr.msk.bf16.gmra.mrb[4].mxu0 %vm119_vm0, %v525_v21  ;;  %s559_s18 = scalar_lea.vmem %s436_s17, 128  ;;  %p564_p1 = scmp.lt.s32.totalorder %s436_s17, %s436_s17 }
  0x19   :  { %512 = vmatprep.mubr.msk.bf16.mxu0 %vm585_vm2, %v584_v3  ;;  %p560_p0 = scmp.ne.s32.totalorder %s436_s17, %s559_s18  ;;  %p565_p2 = scmp.lt.s32.totalorder %s559_s18, %s559_s18 }
  0x1a   :  { %229 = vperm.xlu0 %520, %v215_v24   ;;  %234 = vperm.xlu1 %521, %v216_v25  }
  0x1b   :  { %p566_p3 = por %p565_p2, %p564_p1 }
  0x1d   :  { %p567_p4 = pnand %p566_p3, %p560_p0 }
  0x1e   :  { %315 = vperm.xlu0 %520, %v311_v26   ;;  %320 = vperm.xlu1 %521, %v312_v27  }
  0x22   :  { %380 = vperm.xlu0 %520, %v377_v28  }
  0x84   :  { %v62_v30 = vpop.permute.xlu0 %61 }
  0x85   :  { %v72_v31 = vpop.permute.xlu1 %71 }
  0x88   :  { %v67_v32 = vpop.permute.xlu0 %66 }
  0x89   :  { %v77_v33 = vpop.permute.xlu1 %76 }
  0x8d   :  { %v82_v37 = vpop.permute.xlu0 %81  ;;  %v87_v42 = vpop.permute.xlu1 %86 }
  0x91   :  { %v92_v44 = vpop.permute.xlu0 %91  ;;  %v97_v48 = vpop.permute.xlu1 %96 }
  0x95   :  { %v220_v4 = vpop.permute.xlu0 %219  ;;  %v225_v5 = vpop.permute.xlu1 %224 }
  0x99   :  { %v230_v6 = vpop.permute.xlu0 %229  ;;  %v235_v10 = vpop.permute.xlu1 %234 }
  0x9d   :  { %v316_v23 = vpop.permute.xlu0 %315  ;;  %v321_v27 = vpop.permute.xlu1 %320 }
  0xe3   :  { %v484_v34 = vpop.f32.mrb[0].mxu0 }
  0xe4   :  { %v175_v35 = vadd.f32 %v484_v34, %v72_v31  ;;  %v166_v36 = vpop.f32.mrb[1].mxu0  ;;  %v375_v34 = vld [vmem:[%s749_s7] sm:$0xf] }
  0xe5   :  { %v167_v38 = vadd.f32 %v166_v36, %v62_v30  ;;  %v485_v39 = vpop.f32.mrb[2].mxu0 }
  0xe6   :  { %529 = vtanh.f32 %v175_v35  ;;  %v178_v40 = vadd.f32 %v485_v39, %v77_v33  ;;  %v169_v41 = vpop.f32.mrb[3].mxu0  ;;  %v381_v35 = vpop.permute.xlu0 %380 }
  0xe7   :  { %531 = vtanh.f32 %v167_v38  ;;  %v170_v43 = vadd.f32 %v169_v41, %v67_v32 }
  0xe8   :  { %533 = vtanh.f32 %v178_v40 }
  0xe9   :  { %535 = vtanh.f32 %v170_v43 }
  0xeb   :  { %v488_v45 = vpop.f32.mrb[4].mxu0 }
  0xec   :  { %v191_v46 = vadd.f32 %v488_v45, %v92_v44  ;;  %v182_v47 = vpop.f32.mrb[5].mxu0 }
  0xed   :  { %v183_v49 = vadd.f32 %v182_v47, %v82_v37  ;;  %v489_v50 = vpop.f32.mrb[6].mxu0 }
  0xee   :  { %537 = vtanh.f32 %v191_v46  ;;  %v194_v51 = vadd.f32 %v489_v50, %v97_v48  ;;  %v185_v52 = vpop.f32.mrb[7].mxu0 }
  0xef   :  { %539 = vtanh.f32 %v183_v49  ;;  %v186_v53 = vadd.f32 %v185_v52, %v87_v42 }
  0xf0   :  { %v530_v54 = vpop.eup %529  ;;  %541 = vtanh.f32 %v194_v51 }
  0xf1   :  { %v532_v55 = vpop.eup %531  ;;  %543 = vtanh.f32 %v186_v53 }
  0xf2   :  { %v534_v56 = vpop.eup %533 }
  0xf3   :  { %v536_v57 = vpop.eup %535  ;;  %v210_v58 = vpack.c.bf16 %v534_v56, %v530_v54 }
  0xf4   :  { %v209_v59 = vpack.c.bf16 %v536_v57, %v532_v55 }
  0xf6   :  { %490 = vmatprep.subr.bf16.mxu1 %v209_v59 }
  0xf7   :  { %491 = vmatpush3.bf16.msra.mxu1 %v209_v59 }
  0xf8   :  { %v538_v60 = vpop.eup %537  ;;  %492 = vmatprep.subr.bf16.mxu1 %v210_v58 }
  0xf9   :  { %v540_v61 = vpop.eup %539 }
  0xfa   :  { %v542_v62 = vpop.eup %541 }
  0xfb   :  { %v544_v63 = vpop.eup %543  ;;  %493 = vmatpush3.bf16.msra.mxu1 %v210_v58  ;;  %v212_v0 = vpack.c.bf16 %v542_v62, %v538_v60 }
  0xfc   :  { %v211_v1 = vpack.c.bf16 %v544_v63, %v540_v61 }
  0xfe   :  { %494 = vmatprep.subr.bf16.mxu1 %v211_v1 }
  0xff   :  { %495 = vmatpush3.bf16.msra.mxu1 %v211_v1 }
 0x100   :  { %496 = vmatprep.subr.bf16.mxu1 %v212_v0 }
 0x103   :  { %497 = vmatpush3.bf16.msra.mxu1 %v212_v0 }
 0x104   :  { %502 = vmatprep.subr.bf16.mxu1 %v584_v3 }
 0x106   :  { %499 = vmatmul.mubr.msk.bf16.vlgmr.msra.gmra.mrb[0].mxu1 %vm247_vm1, %v527_v2 }
 0x107   :  { %506 = vmatprep.mubr.msk.bf16.mxu1 %vm585_vm2, %v584_v3 }
 0x1d9   :  { %v500_v7 = vpop.f32.mrb[0].mxu1 }
 0x1da   :  { %v297_v8 = vadd.f32 %v500_v7, %v230_v6  ;;  %v288_v9 = vpop.f32.mrb[1].mxu1 }
 0x1db   :  { %v289_v11 = vadd.f32 %v288_v9, %v220_v4  ;;  %v501_v12 = vpop.f32.mrb[2].mxu1 }
 0x1dc   :  { %545 = vtanh.f32 %v297_v8  ;;  %v300_v13 = vadd.f32 %v501_v12, %v235_v10  ;;  %v291_v14 = vpop.f32.mrb[3].mxu1 }
 0x1dd   :  { %547 = vtanh.f32 %v289_v11  ;;  %v292_v15 = vadd.f32 %v291_v14, %v225_v5 }
 0x1de   :  { %549 = vtanh.f32 %v300_v13 }
 0x1df   :  { %551 = vtanh.f32 %v292_v15 }
 0x1e6   :  { %v546_v16 = vpop.eup %545 }
 0x1e7   :  { %v548_v17 = vpop.eup %547 }
 0x1e8   :  { %v550_v18 = vpop.eup %549 }
 0x1e9   :  { %v552_v19 = vpop.eup %551  ;;  %v310_v20 = vpack.c.bf16 %v550_v18, %v546_v16 }
 0x1ea   :  { %v309_v21 = vpack.c.bf16 %v552_v19, %v548_v17 }
 0x1ec   :  { %503 = vmatpush3.bf16.msra.mxu1 %v309_v21 }
 0x1ed   :  { %504 = vmatprep.subr.bf16.mxu1 %v584_v3 }
 0x1f0   :  { %505 = vmatpush3.bf16.msra.mxu1 %v310_v20 }
 0x1f3   :  { %507 = vmatmul.mubr.msk.bf16.vlgmr.msra.gmra.mrb[4].mxu1 %vm328_vm3, %v528_v22 }
 0x2c6   :  { %v366_v24 = vpop.f32.mrb[4].mxu1 }
 0x2c7   :  { %v367_v25 = vadd.f32 %v366_v24, %v316_v23  ;;  %v508_v26 = vpop.f32.mrb[5].mxu1 }
 0x2c8   :  { %v369_v28 = vpop.f32.mrb[6].mxu1 }
 0x2c9   :  { %v370_v29 = vadd.f32 %v369_v28, %v321_v27  ;;  %v509_v30 = vpop.f32.mrb[7].mxu1  ;;  %553 = vtanh.f32 %v367_v25 }
 0x2cb   :  { %555 = vtanh.f32 %v370_v29 }
 0x2d3   :  { %v554_v31 = vpop.eup %553 }
 0x2d5   :  { %v556_v32 = vpop.eup %555 }
 0x2d6   :  { %v376_v33 = vpack.c.bf16 %v556_v32, %v554_v31 }
 0x2d8   :  { %511 = vmatpush3.bf16.msra.mxu0 %v376_v33 }
 0x2db   :  { %513 = vmatmul.mubr.msk.bf16.vlgmr.msra.gmra.mrb[8].mxu0 %vm383_vm4, %v375_v34 }
 0x3ae   :  { %v421_v36 = vpop.f32.mrb[8].mxu0 }
 0x3af   :  { %v422_v37 = vadd.f32 %v421_v36, %v381_v35  ;;  %v514_v38 = vpop.f32.mrb[9].mxu0 }
 0x3b0   :  { %v424_v39 = vpop.f32.mrb[10].mxu0 }
 0x3b1   :  { %557 = vtanh.f32 %v422_v37  ;;  %v515_v40 = vpop.f32.mrb[11].mxu0 }
 0x3bb   :  { %v558_v41 = vpop.eup %557 }
 0x3bc   :  { %428 = vst [vmem:[#allocation2] sm:$0xff] %v558_v41 }
 0x3bd   :  { %570 = shalt.err (!%p567_p4)
}
 0x3be   :  { %s571_s20 = scalar_lea.hbm %s751_s9, 128 }
 0x3bf   :  { %p572_p5 = scmp.ne.s32.totalorder %s751_s9, %s571_s20  ;;  %p575_p6 = scmp.lt.u32.totalorder %s571_s20, %s751_s9 }
 0x3c1   :  { %p577_p7 = pnand %p575_p6, %p572_p5 }
 0x3c3   :  { %580 = shalt.err (!%p577_p7)
}
 0x3c4   :  { %438 = dma.vmem_to_hbm [thread:$0]  %s436_s17, 128, %s751_s9, [#allocation3]  }
 0x3c5   :  { %581 = dma.done.wait [#allocation3], 128  }
 0x3c6   :  { %582 = vsyncadd [#allocation3], 4294967168 }
 0x3c7   :  { %442 = vsyncpa [#allocation3], 1 }

</bundles_post_ra>
